<compile_context>
chip_gen: v7x
topology: tpu7x:2x2x1
jax: 0.10.0
libtpu: 0.0.40
codegen_flags: <defaults>
</compile_context>

<pallas_src>
import jax
import jax.numpy as jnp
from jax.experimental import pallas as pl
from jax.experimental.pallas import tpu as pltpu

IN_FEATURES = 60
IN_PAD = 64                # 60 rounded up to a multiple of 64 (lane-friendly K)
HIDDEN = 1000
HIDDEN_PAD = 1024          # 1000 rounded up to a multiple of 128
HIDDEN_CHUNK = 256         # fused-hidden chunk size (4 chunks)
OUT_FEATURES = 10
DEFAULT_TB = 256           # batch tile: fills the 256x256 MXU on v6e/v7x


def _cdiv(a, b):
    return (a + b - 1) // b


def _round_up(n, m):
    return ((n + m - 1) // m) * m


def mlp_kernel(x_ref, w1_ref, b1_ref, w2_ref, b2_ref, o_ref):
    # In-kernel bf16 cast of the activation tile (free VPU work hidden under MXU).
    x = x_ref[...].astype(jnp.bfloat16)                       # (TB, IN_PAD)
    tb = x_ref.shape[0]

    # Fused hidden dimension: never materialize the full (TB, 1024) f32 h.
    # Static Python loop (4 iters) -> static ref slices, f32 accumulator in vregs.
    logits = jnp.zeros((tb, OUT_FEATURES), jnp.float32)
    for c in range(HIDDEN_PAD // HIDDEN_CHUNK):
        c0 = c * HIDDEN_CHUNK
        # fc1 chunk: bf16 MXU matmul, f32 accumulation, bias + ReLU in f32.
        h = jnp.dot(x, w1_ref[:, c0:c0 + HIDDEN_CHUNK],
                    preferred_element_type=jnp.float32)
        h = jnp.maximum(h + b1_ref[:, c0:c0 + HIDDEN_CHUNK], 0.0)
        # fc2 chunk: feed MXU bf16, accumulate logits in f32.
        logits = logits + jnp.dot(h.astype(jnp.bfloat16),
                                  w2_ref[c0:c0 + HIDDEN_CHUNK, :],
                                  preferred_element_type=jnp.float32)

    logits = logits + b2_ref[...]                              # (1, OUT) broadcasts

    # log_softmax along dim=1 (last axis), numerically stable, f32.
    m = jnp.max(logits, axis=-1, keepdims=True)
    shifted = logits - m
    lse = jnp.log(jnp.sum(jnp.exp(shifted), axis=-1, keepdims=True))
    o_ref[...] = (shifted - lse).astype(o_ref.dtype)


def prepare_params(w1, b1, w2, b2):
    """One-time weight prep: zero-pad 60->64 and 1000->1024, cast weights to bf16.

    Padded input features see zero x columns and zero w1 rows -> no contribution.
    Padded hidden units have zero fc1 bias (so ReLU output is 0) and zero fc2
    rows -> no contribution.
    """
    w1p = jnp.pad(w1, ((0, IN_PAD - IN_FEATURES),
                       (0, HIDDEN_PAD - HIDDEN))).astype(jnp.bfloat16)
    b1p = jnp.pad(b1, (0, HIDDEN_PAD - HIDDEN)).reshape(1, HIDDEN_PAD).astype(jnp.float32)
    w2p = jnp.pad(w2, ((0, HIDDEN_PAD - HIDDEN), (0, 0))).astype(jnp.bfloat16)
    b2p = b2.reshape(1, OUT_FEATURES).astype(jnp.float32)
    return w1p, b1p, w2p, b2p


def net_forward(x, params, *, tb=DEFAULT_TB):
    """x: [B, 60] float32 -> [B, 10] float32 log-probabilities."""
    w1p, b1p, w2p, b2p = params
    B = x.shape[0]

    # Pick tile count first, then TB: bounds batch-pad waste to < 16 rows and
    # keeps TB a multiple of 16 (clean bf16 sublane packing). Guarantee >= 2
    # tiles when B > 16 so both v7x TensorCores get work (harmless serial loop
    # on v5e/v6e).
    nt = _cdiv(B, tb)
    if B > 16:
        nt = max(nt, 2)
    TB = _round_up(_cdiv(B, nt), 16)
    B_pad = nt * TB

    # Pad batch & feature dims in f32 (bf16 cast happens inside the kernel).
    # Padded rows produce finite bias-only log-probs and are sliced off below —
    # the [:B] slice is load-bearing, do not remove it.
    x_pad = jnp.pad(x, ((0, B_pad - B), (0, IN_PAD - IN_FEATURES)))

    out = pl.pallas_call(
        mlp_kernel,
        out_shape=jax.ShapeDtypeStruct((B_pad, OUT_FEATURES), jnp.float32),
        grid=(nt,),
        in_specs=[
            pl.BlockSpec((TB, IN_PAD), lambda i: (i, 0)),                # x: batch-tiled
            pl.BlockSpec((IN_PAD, HIDDEN_PAD), lambda i: (0, 0)),        # w1: resident
            pl.BlockSpec((1, HIDDEN_PAD), lambda i: (0, 0)),             # b1: resident
            pl.BlockSpec((HIDDEN_PAD, OUT_FEATURES), lambda i: (0, 0)),  # w2: resident
            pl.BlockSpec((1, OUT_FEATURES), lambda i: (0, 0)),           # b2: resident
        ],
        out_specs=pl.BlockSpec((TB, OUT_FEATURES), lambda i: (i, 0)),
        compiler_params=pltpu.CompilerParams(
            dimension_semantics=("parallel",),
        ),
    )(x_pad, w1p, b1p, w2p, b2p)

    return out[:B]


def init_params(key):
    """Deterministic init matching PyTorch nn.Linear shapes (stored transposed)."""
    k1, k2, k3, k4 = jax.random.split(key, 4)
    bound1 = 1.0 / jnp.sqrt(IN_FEATURES)
    bound2 = 1.0 / jnp.sqrt(HIDDEN)
    w1 = jax.random.uniform(k1, (IN_FEATURES, HIDDEN), jnp.float32, -bound1, bound1)
    b1 = jax.random.uniform(k2, (HIDDEN,), jnp.float32, -bound1, bound1)
    w2 = jax.random.uniform(k3, (HIDDEN, OUT_FEATURES), jnp.float32, -bound2, bound2)
    b2 = jax.random.uniform(k4, (OUT_FEATURES,), jnp.float32, -bound2, bound2)
    return w1, b1, w2, b2


if __name__ == "__main__":
    key = jax.random.PRNGKey(0)
    kx, kp = jax.random.split(key)
    B = 8
    x = jax.random.normal(kx, (B, IN_FEATURES), jnp.float32)
    w1, b1, w2, b2 = init_params(kp)

    params = prepare_params(w1, b1, w2, b2)   # pad + bf16 cast, done once
    out = net_forward(x, params)
    jax.block_until_ready(out)

    # Sanity check vs plain-JAX f32 reference.
    # NOTE: bf16 weights/activations inside the kernel are an intentional
    # accuracy/perf tradeoff -> loose 5e-2 tolerance.
    h_ref = jnp.maximum(x @ w1 + b1, 0.0)
    logits_ref = h_ref @ w2 + b2
    ref = jax.nn.log_softmax(logits_ref, axis=1)
    assert out.shape == (B, OUT_FEATURES)
    assert jnp.allclose(out, ref, atol=5e-2, rtol=5e-2), (
        f"max abs err {jnp.max(jnp.abs(out - ref))}")

    print("KERNEL_OK")
</pallas_src>

<mosaic_0001>
module attributes {stable_mosaic.version = 11 : i64} {
  func.func @mlp_kernel(%arg0: i32, %arg1: memref<16x64xf32, #tpu.memory_space<vmem>>, %arg2: memref<64x1024xbf16, #tpu.memory_space<vmem>>, %arg3: memref<1x1024xf32, #tpu.memory_space<vmem>>, %arg4: memref<1024x10xbf16, #tpu.memory_space<vmem>>, %arg5: memref<1x10xf32, #tpu.memory_space<vmem>>, %arg6: memref<16x10xf32, #tpu.memory_space<vmem>>) attributes {dimension_semantics = [#tpu.dimension_semantics<parallel>], iteration_bounds = array<i64: 1>, scalar_prefetch = 0 : i64, scratch_operands = 0 : i64, tpu.core_type = #tpu.core_type<tc>, window_params = [{transform_indices = @transform_0, window_bounds = array<i64: 16, 64>}, {pipeline_mode = #tpu.pipeline_mode<synchronous>, transform_indices = @transform_1, window_bounds = array<i64: 64, 1024>}, {pipeline_mode = #tpu.pipeline_mode<synchronous>, transform_indices = @transform_2, window_bounds = array<i64: 1, 1024>}, {pipeline_mode = #tpu.pipeline_mode<synchronous>, transform_indices = @transform_3, window_bounds = array<i64: 1024, 10>}, {pipeline_mode = #tpu.pipeline_mode<synchronous>, transform_indices = @transform_4, window_bounds = array<i64: 1, 10>}, {transform_indices = @transform_5, window_bounds = array<i64: 16, 10>}]} {
    %c0 = arith.constant 0 : index
    %c0_0 = arith.constant 0 : index
    %0 = vector.load %arg1[%c0, %c0_0] : memref<16x64xf32, #tpu.memory_space<vmem>>, vector<16x64xf32>
    %1 = arith.truncf %0 : vector<16x64xf32> to vector<16x64xbf16>
    %cst = arith.constant 0.000000e+00 : f32
    %2 = vector.broadcast %cst : f32 to vector<16x10xf32>
    %c0_1 = arith.constant 0 : index
    %c0_2 = arith.constant 0 : index
    %3 = vector.load %arg2[%c0_1, %c0_2] : memref<64x1024xbf16, #tpu.memory_space<vmem>>, vector<64x256xbf16>
    %cst_3 = arith.constant dense<0.000000e+00> : vector<16x256xf32>
    %4 = tpu.matmul %1, %3, %cst_3 {dimension_numbers = #tpu.dot_dimension_numbers<[1], [0], [0], [1], [0, 0, 1, 1], [], []>} : vector<16x64xbf16>, vector<64x256xbf16>, vector<16x256xf32> -> vector<16x256xf32>
    %c0_4 = arith.constant 0 : index
    %c0_5 = arith.constant 0 : index
    %5 = vector.load %arg3[%c0_4, %c0_5] : memref<1x1024xf32, #tpu.memory_space<vmem>>, vector<1x256xf32>
    %6 = vector.broadcast %5 : vector<1x256xf32> to vector<16x256xf32>
    %7 = arith.addf %4, %6 : vector<16x256xf32>
    %cst_6 = arith.constant 0.000000e+00 : f32
    %8 = vector.broadcast %cst_6 : f32 to vector<16x256xf32>
    %9 = arith.maximumf %7, %8 : vector<16x256xf32>
    %10 = arith.truncf %9 : vector<16x256xf32> to vector<16x256xbf16>
    %c0_7 = arith.constant 0 : index
    %c0_8 = arith.constant 0 : index
    %11 = vector.load %arg4[%c0_7, %c0_8] : memref<1024x10xbf16, #tpu.memory_space<vmem>>, vector<256x10xbf16>
    %cst_9 = arith.constant dense<0.000000e+00> : vector<16x10xf32>
    %12 = tpu.matmul %10, %11, %cst_9 {dimension_numbers = #tpu.dot_dimension_numbers<[1], [0], [0], [1], [0, 0, 1, 1], [], []>} : vector<16x256xbf16>, vector<256x10xbf16>, vector<16x10xf32> -> vector<16x10xf32>
    %13 = arith.addf %2, %12 : vector<16x10xf32>
    %c0_10 = arith.constant 0 : index
    %c256 = arith.constant 256 : index
    %14 = vector.load %arg2[%c0_10, %c256] : memref<64x1024xbf16, #tpu.memory_space<vmem>>, vector<64x256xbf16>
    %cst_11 = arith.constant dense<0.000000e+00> : vector<16x256xf32>
    %15 = tpu.matmul %1, %14, %cst_11 {dimension_numbers = #tpu.dot_dimension_numbers<[1], [0], [0], [1], [0, 0, 1, 1], [], []>} : vector<16x64xbf16>, vector<64x256xbf16>, vector<16x256xf32> -> vector<16x256xf32>
    %c0_12 = arith.constant 0 : index
    %c256_13 = arith.constant 256 : index
    %16 = vector.load %arg3[%c0_12, %c256_13] : memref<1x1024xf32, #tpu.memory_space<vmem>>, vector<1x256xf32>
    %17 = vector.broadcast %16 : vector<1x256xf32> to vector<16x256xf32>
    %18 = arith.addf %15, %17 : vector<16x256xf32>
    %cst_14 = arith.constant 0.000000e+00 : f32
    %19 = vector.broadcast %cst_14 : f32 to vector<16x256xf32>
    %20 = arith.maximumf %18, %19 : vector<16x256xf32>
    %21 = arith.truncf %20 : vector<16x256xf32> to vector<16x256xbf16>
    %c256_15 = arith.constant 256 : index
    %c0_16 = arith.constant 0 : index
    %22 = vector.load %arg4[%c256_15, %c0_16] : memref<1024x10xbf16, #tpu.memory_space<vmem>>, vector<256x10xbf16>
    %cst_17 = arith.constant dense<0.000000e+00> : vector<16x10xf32>
    %23 = tpu.matmul %21, %22, %cst_17 {dimension_numbers = #tpu.dot_dimension_numbers<[1], [0], [0], [1], [0, 0, 1, 1], [], []>} : vector<16x256xbf16>, vector<256x10xbf16>, vector<16x10xf32> -> vector<16x10xf32>
    %24 = arith.addf %13, %23 : vector<16x10xf32>
    %c0_18 = arith.constant 0 : index
    %c512 = arith.constant 512 : index
    %25 = vector.load %arg2[%c0_18, %c512] : memref<64x1024xbf16, #tpu.memory_space<vmem>>, vector<64x256xbf16>
    %cst_19 = arith.constant dense<0.000000e+00> : vector<16x256xf32>
    %26 = tpu.matmul %1, %25, %cst_19 {dimension_numbers = #tpu.dot_dimension_numbers<[1], [0], [0], [1], [0, 0, 1, 1], [], []>} : vector<16x64xbf16>, vector<64x256xbf16>, vector<16x256xf32> -> vector<16x256xf32>
    %c0_20 = arith.constant 0 : index
    %c512_21 = arith.constant 512 : index
    %27 = vector.load %arg3[%c0_20, %c512_21] : memref<1x1024xf32, #tpu.memory_space<vmem>>, vector<1x256xf32>
    %28 = vector.broadcast %27 : vector<1x256xf32> to vector<16x256xf32>
    %29 = arith.addf %26, %28 : vector<16x256xf32>
    %cst_22 = arith.constant 0.000000e+00 : f32
    %30 = vector.broadcast %cst_22 : f32 to vector<16x256xf32>
    %31 = arith.maximumf %29, %30 : vector<16x256xf32>
    %32 = arith.truncf %31 : vector<16x256xf32> to vector<16x256xbf16>
    %c512_23 = arith.constant 512 : index
    %c0_24 = arith.constant 0 : index
    %33 = vector.load %arg4[%c512_23, %c0_24] : memref<1024x10xbf16, #tpu.memory_space<vmem>>, vector<256x10xbf16>
    %cst_25 = arith.constant dense<0.000000e+00> : vector<16x10xf32>
    %34 = tpu.matmul %32, %33, %cst_25 {dimension_numbers = #tpu.dot_dimension_numbers<[1], [0], [0], [1], [0, 0, 1, 1], [], []>} : vector<16x256xbf16>, vector<256x10xbf16>, vector<16x10xf32> -> vector<16x10xf32>
    %35 = arith.addf %24, %34 : vector<16x10xf32>
    %c0_26 = arith.constant 0 : index
    %c768 = arith.constant 768 : index
    %36 = vector.load %arg2[%c0_26, %c768] : memref<64x1024xbf16, #tpu.memory_space<vmem>>, vector<64x256xbf16>
    %cst_27 = arith.constant dense<0.000000e+00> : vector<16x256xf32>
    %37 = tpu.matmul %1, %36, %cst_27 {dimension_numbers = #tpu.dot_dimension_numbers<[1], [0], [0], [1], [0, 0, 1, 1], [], []>} : vector<16x64xbf16>, vector<64x256xbf16>, vector<16x256xf32> -> vector<16x256xf32>
    %c0_28 = arith.constant 0 : index
    %c768_29 = arith.constant 768 : index
    %38 = vector.load %arg3[%c0_28, %c768_29] : memref<1x1024xf32, #tpu.memory_space<vmem>>, vector<1x256xf32>
    %39 = vector.broadcast %38 : vector<1x256xf32> to vector<16x256xf32>
    %40 = arith.addf %37, %39 : vector<16x256xf32>
    %cst_30 = arith.constant 0.000000e+00 : f32
    %41 = vector.broadcast %cst_30 : f32 to vector<16x256xf32>
    %42 = arith.maximumf %40, %41 : vector<16x256xf32>
    %43 = arith.truncf %42 : vector<16x256xf32> to vector<16x256xbf16>
    %c768_31 = arith.constant 768 : index
    %c0_32 = arith.constant 0 : index
    %44 = vector.load %arg4[%c768_31, %c0_32] : memref<1024x10xbf16, #tpu.memory_space<vmem>>, vector<256x10xbf16>
    %cst_33 = arith.constant dense<0.000000e+00> : vector<16x10xf32>
    %45 = tpu.matmul %43, %44, %cst_33 {dimension_numbers = #tpu.dot_dimension_numbers<[1], [0], [0], [1], [0, 0, 1, 1], [], []>} : vector<16x256xbf16>, vector<256x10xbf16>, vector<16x10xf32> -> vector<16x10xf32>
    %46 = arith.addf %35, %45 : vector<16x10xf32>
    %c0_34 = arith.constant 0 : index
    %c0_35 = arith.constant 0 : index
    %47 = vector.load %arg5[%c0_34, %c0_35] : memref<1x10xf32, #tpu.memory_space<vmem>>, vector<1x10xf32>
    %48 = vector.broadcast %47 : vector<1x10xf32> to vector<16x10xf32>
    %49 = arith.addf %46, %48 : vector<16x10xf32>
    %cst_36 = arith.constant dense<0xFF800000> : vector<16xf32>
    %50 = vector.multi_reduction <maximumf>, %49, %cst_36 [1] : vector<16x10xf32> to vector<16xf32>
    %51 = vector.shape_cast %50 : vector<16xf32> to vector<16x1xf32>
    %52 = vector.broadcast %51 : vector<16x1xf32> to vector<16x10xf32>
    %53 = arith.subf %49, %52 : vector<16x10xf32>
    %54 = math.exp %53 : vector<16x10xf32>
    %cst_37 = arith.constant dense<0.000000e+00> : vector<16xf32>
    %55 = vector.multi_reduction <add>, %54, %cst_37 [1] : vector<16x10xf32> to vector<16xf32>
    %56 = vector.shape_cast %55 : vector<16xf32> to vector<16x1xf32>
    %57 = math.log %56 : vector<16x1xf32>
    %58 = vector.broadcast %57 : vector<16x1xf32> to vector<16x10xf32>
    %59 = arith.subf %53, %58 : vector<16x10xf32>
    %c0_38 = arith.constant 0 : index
    %c0_39 = arith.constant 0 : index
    %60 = vector.load %arg6[%c0_38, %c0_39] : memref<16x10xf32, #tpu.memory_space<vmem>>, vector<16x10xf32>
    tpu.vector_store %arg6[%c0_38, %c0_39], %59 {strides = array<i32>} : memref<16x10xf32, #tpu.memory_space<vmem>>, vector<16x10xf32>,
    return
  }
  func.func @transform_0(%arg0: i32) -> (i32, i32) {
    %c0_i32 = arith.constant 0 : i32
    %c0_i32_0 = arith.constant 0 : i32
    return %arg0, %c0_i32 : i32, i32
  }
  func.func @transform_1(%arg0: i32) -> (i32, i32) {
    %c0_i32 = arith.constant 0 : i32
    %c0_i32_0 = arith.constant 0 : i32
    %c0_i32_1 = arith.constant 0 : i32
    return %c0_i32, %c0_i32_0 : i32, i32
  }
  func.func @transform_2(%arg0: i32) -> (i32, i32) {
    %c0_i32 = arith.constant 0 : i32
    %c0_i32_0 = arith.constant 0 : i32
    %c0_i32_1 = arith.constant 0 : i32
    return %c0_i32, %c0_i32_0 : i32, i32
  }
  func.func @transform_3(%arg0: i32) -> (i32, i32) {
    %c0_i32 = arith.constant 0 : i32
    %c0_i32_0 = arith.constant 0 : i32
    %c0_i32_1 = arith.constant 0 : i32
    return %c0_i32, %c0_i32_0 : i32, i32
  }
  func.func @transform_4(%arg0: i32) -> (i32, i32) {
    %c0_i32 = arith.constant 0 : i32
    %c0_i32_0 = arith.constant 0 : i32
    %c0_i32_1 = arith.constant 0 : i32
    return %c0_i32, %c0_i32_0 : i32, i32
  }
  func.func @transform_5(%arg0: i32) -> (i32, i32) {
    %c0_i32 = arith.constant 0 : i32
    %c0_i32_0 = arith.constant 0 : i32
    return %arg0, %c0_i32 : i32, i32
  }
}

</mosaic_0001>

<bundles_post_ra>
// kernel: tpu_custom_call.1
= control target key start
LH: loop header
LB: loop body
LE: loop exit
PB: predicated region body
PF: predicated region fallthrough
CT: control target
= control target key end

     0   :  { %v1486_v6 = vmov 0   ;;  %vm85_vm0 = vcmask 523264   ;;  %s1873_s0 = inlined_call_operand.vmem [shape: f32[16,64], index: 0, kind: input, shape index: {}]   ;;  %s1874_s1 = inlined_call_operand.vmem [shape: bf16[64,1024], index: 1, kind: input, shape index: {}]   ;;  %s1875_s2 = inlined_call_operand.vmem [shape: f32[1,1024], index: 2, kind: input, shape index: {}]   ;;  %s1876_s3 = inlined_call_operand.vmem [shape: bf16[1024,10], index: 3, kind: input, shape index: {}]   ;;  %s1877_s4 = inlined_call_operand.vmem [shape: f32[1,10], index: 4, kind: input, shape index: {}]   ;;  %s1878_s5 = inlined_call_operand.hbm [shape: f32[16,10], index: 5, kind: output, shape index: {}]  }
   0x1   :  { %v25_v0 = vld [vmem:[%s1874_s1] sm:$0xff]  ;;  %121 = vmatprep.mubr.bf16.mxu1 %v1486_v6  ;;  %v170_v16 = vld [vmem:[%s1874_s1 + $0x8] sm:$0xff]  ;;  %v1394_v44 = vld [vmem:[%s1876_s3 + $0x50] sm:$0xff]  }
   0x2   :  { %v26_v1 = vld [vmem:[%s1874_s1 + $0x20] sm:$0xff]  ;;  %v171_v18 = vld [vmem:[%s1874_s1 + $0x28] sm:$0xff]  ;;  %v1395_v45 = vld [vmem:[%s1876_s3 + $0x10] sm:$0xff]  }
   0x3   :  { %v27_v2 = vld [vmem:[%s1874_s1 + $0x40] sm:$0xff]  ;;  %v1198_v3 = vcombine.high %v25_v0, %v26_v1  ;;  %v1197_v4 = vcombine.low %v25_v0, %v26_v1  ;;  %v23_v19 = vld [vmem:[%s1873_s0 + $0x8] sm:$0xff]  ;;  %v1207_v22 = vcombine.high %v170_v16, %v171_v18  ;;  %v1206_v27 = vcombine.low %v170_v16, %v171_v18  ;;  %v1396_v46 = vld [vmem:[%s1876_s3 + $0x58] sm:$0xff]  }
   0x4   :  { %v28_v5 = vld [vmem:[%s1874_s1 + $0x60] sm:$0xff]  ;;  %v172_v21 = vld [vmem:[%s1874_s1 + $0x48] sm:$0xff]  ;;  %v1397_v47 = vld [vmem:[%s1876_s3 + $0x18] sm:$0xff]  }
   0x5   :  { %v1200_v7 = vcombine.high %v27_v2, %v28_v5  ;;  %v29_v8 = vld [vmem:[%s1874_s1 + $0x80] sm:$0xff]  ;;  %89 = vmatprep.subr.bf16.mxu1 %v1198_v3  ;;  %v1199_v10 = vcombine.low %v27_v2, %v28_v5  ;;  %v173_v23 = vld [vmem:[%s1874_s1 + $0x68] sm:$0xff] }
   0x6   :  { %v30_v9 = vld [vmem:[%s1874_s1 + $0xa0] sm:$0xff]  ;;  %90 = vmatpush1.bf16.msra.mxu1 %v1197_v4  ;;  %v174_v28 = vld [vmem:[%s1874_s1 + $0x88] sm:$0xff]  ;;  %v1209_v29 = vcombine.high %v172_v21, %v173_v23  ;;  %v1208_v33 = vcombine.low %v172_v21, %v173_v23 }
   0x7   :  { %91 = vmatprep.subr.bf16.mxu1 %v1200_v7  ;;  %v1202_v11 = vcombine.high %v29_v8, %v30_v9  ;;  %v31_v12 = vld [vmem:[%s1874_s1 + $0xc0] sm:$0xff]  ;;  %v1201_v14 = vcombine.low %v29_v8, %v30_v9  ;;  %v175_v30 = vld [vmem:[%s1874_s1 + $0xa8] sm:$0xff] }
   0x8   :  { %v32_v13 = vld [vmem:[%s1874_s1 + $0xe0] sm:$0xff]  ;;  %v1402_v31 = vld [vmem:[%s1876_s3 + $0xc8] sm:$0xff]   ;;  %v1211_v35 = vcombine.high %v174_v28, %v175_v30  ;;  %v1210_v37 = vcombine.low %v174_v28, %v175_v30 }
   0x9   :  { %v1204_v15 = vcombine.high %v31_v12, %v32_v13  ;;  %v22_v17 = vld [vmem:[%s1873_s0] sm:$0xff]  ;;  %v1203_v20 = vcombine.low %v31_v12, %v32_v13  ;;  %v1403_v32 = vld [vmem:[%s1876_s3 + $0x88] sm:$0xff]  }
   0xa   :  { %92 = vmatpush1.bf16.msra.mxu1 %v1199_v10  ;;  %v1398_v24 = vld [vmem:[%s1876_s3 + $0xc0] sm:$0xff]   ;;  %v1566_v25 = vpack.c.bf16 %v23_v19, %v22_v17  ;;  %v176_v34 = vld [vmem:[%s1874_s1 + $0xc8] sm:$0xff] }
   0xb   :  { %93 = vmatprep.subr.bf16.mxu1 %v1202_v11  ;;  %v1399_v26 = vld [vmem:[%s1876_s3 + $0x80] sm:$0xff]   ;;  %1298 = vmatprep.subr.bf16.mxu0 %v1398_v24  ;;  %v177_v36 = vld [vmem:[%s1874_s1 + $0xe8] sm:$0xff] }
   0xc   :  { %1299 = vmatpush3.bf16.msra.mxu0 %v1399_v26  ;;  %v1213_v38 = vcombine.high %v176_v34, %v177_v36  ;;  %v1390_v39 = vld [vmem:[%s1876_s3 + $0x40] sm:$0xff]   ;;  %v1212_v40 = vcombine.low %v176_v34, %v177_v36  ;;  %v1392_v42 = vld [vmem:[%s1876_s3 + $0x48] sm:$0xff]  }
   0xd   :  { %1300 = vmatprep.subr.bf16.mxu0 %v1402_v31  ;;  %v1391_v41 = vld [vmem:[%s1876_s3] sm:$0xff]   ;;  %v1393_v43 = vld [vmem:[%s1876_s3 + $0x8] sm:$0xff]  }
   0xe   :  { %94 = vmatpush1.bf16.msra.mxu1 %v1201_v14  ;;  %v1400_v48 = vld [vmem:[%s1876_s3 + $0x60] sm:$0xff]   ;;  %v1404_v50 = vld [vmem:[%s1876_s3 + $0x68] sm:$0xff]  }
   0xf   :  { %95 = vmatprep.subr.bf16.mxu1 %v1204_v15  ;;  %v1401_v49 = vld [vmem:[%s1876_s3 + $0x20] sm:$0xff]  }
  0x10   :  { %1301 = vmatpush3.bf16.msra.mxu0 %v1403_v32 }
  0x12   :  { %96 = vmatpush1.bf16.msra.mxu1 %v1203_v20 }
  0x13   :  { %230 = vmatprep.subr.bf16.mxu1 %v1207_v22 }
  0x15   :  { %1205 = vmatmul.mubr.msk.bf16.vlgmr.msra.gmra.mrb[0].mxu1 %vm85_vm0, %v1566_v25 }
  0x16   :  { %231 = vmatpush1.bf16.msra.mxu1 %v1206_v27  ;;  %262 = vmatprep.mubr.bf16.mxu1 %v1486_v6 }
  0x17   :  { %232 = vmatprep.subr.bf16.mxu1 %v1209_v29 }
  0x1a   :  { %233 = vmatpush1.bf16.msra.mxu1 %v1208_v33 }
  0x1b   :  { %234 = vmatprep.subr.bf16.mxu1 %v1211_v35 }
  0x1e   :  { %235 = vmatpush1.bf16.msra.mxu1 %v1210_v37 }
  0x1f   :  { %236 = vmatprep.subr.bf16.mxu1 %v1213_v38 }
  0x22   :  { %237 = vmatpush1.bf16.msra.mxu1 %v1212_v40 }
  0x23   :  { %1320 = vmatprep.subr.bf16.mxu1 %v1390_v39 }
  0x25   :  { %1214 = vmatmul.mubr.msk.bf16.vlgmr.msra.gmra.mrb[4].mxu1 %vm85_vm0, %v1566_v25 }
  0x26   :  { %1321 = vmatpush3.bf16.msra.mxu1 %v1391_v41 }
  0x27   :  { %1322 = vmatprep.subr.bf16.mxu1 %v1392_v42 }
  0x2a   :  { %1323 = vmatpush3.bf16.msra.mxu1 %v1393_v43 }
  0x2b   :  { %1324 = vmatprep.subr.bf16.mxu1 %v1394_v44 }
  0x2e   :  { %1325 = vmatpush3.bf16.msra.mxu1 %v1395_v45 }
  0x2f   :  { %1326 = vmatprep.subr.bf16.mxu1 %v1396_v46 }
  0x32   :  { %1327 = vmatpush3.bf16.msra.mxu1 %v1397_v47 }
  0x33   :  { %1328 = vmatprep.subr.bf16.mxu1 %v1400_v48 }
  0x36   :  { %1329 = vmatpush3.bf16.msra.mxu1 %v1401_v49 }
  0x37   :  { %1330 = vmatprep.subr.bf16.mxu1 %v1404_v50 }
  0x38   :  { %10 = vsyncpa [#allocation3], 0  ;;  %v1405_v51 = vld [vmem:[%s1876_s3 + $0x28] sm:$0xff]   ;;  %v1406_v52 = vld [vmem:[%s1876_s3 + $0xd0] sm:$0xff]   ;;  %v35_v9 = vlaneseq  ;;  %vm1154_vm1 = vcmask 80896  }
  0x39   :  { %v1407_v53 = vld [vmem:[%s1876_s3 + $0x90] sm:$0xff]   ;;  %1302 = vmatprep.subr.bf16.mxu0 %v1406_v52  ;;  %v1410_v56 = vld [vmem:[%s1876_s3 + $0xd8] sm:$0xff]   ;;  %v1414_v60 = vld [vmem:[%s1876_s3 + $0xe0] sm:$0xff]  }
  0x3a   :  { %1331 = vmatpush3.bf16.msra.mxu1 %v1405_v51  ;;  %v1408_v54 = vld [vmem:[%s1876_s3 + $0x70] sm:$0xff]   ;;  %1303 = vmatpush3.bf16.msra.mxu0 %v1407_v53  ;;  %v1411_v57 = vld [vmem:[%s1876_s3 + $0x98] sm:$0xff]   ;;  %v1415_v61 = vld [vmem:[%s1876_s3 + $0xa0] sm:$0xff]   ;;  %v36_v10 = vshrl.u32 %v35_v9, 7 }
  0x3b   :  { %v1409_v55 = vld [vmem:[%s1876_s3 + $0x30] sm:$0xff]   ;;  %1332 = vmatprep.subr.bf16.mxu1 %v1408_v54  ;;  %v1412_v58 = vld [vmem:[%s1876_s3 + $0x78] sm:$0xff]   ;;  %1304 = vmatprep.subr.bf16.mxu0 %v1410_v56  ;;  %v1416_v62 = vld [vmem:[%s1876_s3 + $0xe8] sm:$0xff]  }
  0x3c   :  { %v1413_v59 = vld [vmem:[%s1876_s3 + $0x38] sm:$0xff]   ;;  %v1417_v63 = vld [vmem:[%s1876_s3 + $0xa8] sm:$0xff]   ;;  %v1418_v0 = vld [vmem:[%s1876_s3 + $0xf0] sm:$0xff]   ;;  %v1684_v11 = vsub.s32 0, %v36_v10  ;;  %v1689_v13 = vsub.s32 1, %v36_v10 }
  0x3d   :  { %v1419_v1 = vld [vmem:[%s1876_s3 + $0xb0] sm:$0xff]   ;;  %v1420_v2 = vld [vmem:[%s1876_s3 + $0xf8] sm:$0xff]   ;;  %v33_v12 = vld [vmem:[%s1875_s2] sm:$0x3] }
  0x3e   :  { %1333 = vmatpush3.bf16.msra.mxu1 %v1409_v55  ;;  %1305 = vmatpush3.bf16.msra.mxu0 %v1411_v57  ;;  %v1421_v3 = vld [vmem:[%s1876_s3 + $0xb8] sm:$0xff]   ;;  %v585_v4 = vld [vmem:[%s1874_s1 + $0x10] sm:$0xff]  ;;  %v38_v14 = vrot.slane %v33_v12, %v1684_v11  ;;  %v42_v15 = vrot.slane %v33_v12, %v1689_v13  ;;  %v178_v31 = vld [vmem:[%s1875_s2 + $0x2] sm:$0x3] }
  0x3f   :  { %1334 = vmatprep.subr.bf16.mxu1 %v1412_v58  ;;  %1306 = vmatprep.subr.bf16.mxu0 %v1414_v60  ;;  %v586_v5 = vld [vmem:[%s1874_s1 + $0x30] sm:$0xff]  ;;  %v183_v32 = vrot.slane %v178_v31, %v1684_v11  ;;  %v187_v33 = vrot.slane %v178_v31, %v1689_v13  ;;  %v866_v60 = vld [vmem:[%s1874_s1 + $0x38] sm:$0xff] }
  0x40   :  { %v1248_v7 = vcombine.high %v585_v4, %v586_v5  ;;  %v1247_v8 = vcombine.low %v585_v4, %v586_v5  ;;  %v587_v46 = vld [vmem:[%s1874_s1 + $0x50] sm:$0xff]  ;;  %v870_v4 = vld [vmem:[%s1874_s1 + $0xb8] sm:$0xff] }
  0x41   :  { %v588_v47 = vld [vmem:[%s1874_s1 + $0x70] sm:$0xff]  ;;  %v872_v9 = vld [vmem:[%s1874_s1 + $0xf8] sm:$0xff] }
  0x42   :  { %1335 = vmatpush3.bf16.msra.mxu1 %v1413_v59  ;;  %1307 = vmatpush3.bf16.msra.mxu0 %v1415_v61  ;;  %v1250_v50 = vcombine.high %v587_v46, %v588_v47  ;;  %v589_v51 = vld [vmem:[%s1874_s1 + $0x90] sm:$0xff]  ;;  %v1249_v53 = vcombine.low %v587_v46, %v588_v47  ;;  %v865_v59 = vld [vmem:[%s1874_s1 + $0x18] sm:$0xff] }
  0x43   :  { %1308 = vmatprep.subr.bf16.mxu0 %v1416_v62  ;;  %v590_v52 = vld [vmem:[%s1874_s1 + $0xb0] sm:$0xff]  ;;  %v1273_v62 = vcombine.high %v865_v59, %v866_v60 }
  0x44   :  { %v1252_v54 = vcombine.high %v589_v51, %v590_v52  ;;  %v591_v55 = vld [vmem:[%s1874_s1 + $0xd0] sm:$0xff]  ;;  %v1251_v57 = vcombine.low %v589_v51, %v590_v52 }
  0x45   :  { %v592_v56 = vld [vmem:[%s1874_s1 + $0xf0] sm:$0xff] }
  0x46   :  { %1309 = vmatpush3.bf16.msra.mxu0 %v1417_v63  ;;  %v1254_v58 = vcombine.high %v591_v55, %v592_v56  ;;  %v1253_v61 = vcombine.low %v591_v55, %v592_v56  ;;  %v867_v63 = vld [vmem:[%s1874_s1 + $0x58] sm:$0xff]  ;;  %v1439_v31 = vld [vmem:[%s1876_s3 + $0x1d0] sm:$0xff]  }
  0x47   :  { %1310 = vmatprep.subr.bf16.mxu0 %v1418_v0  ;;  %v868_v0 = vld [vmem:[%s1874_s1 + $0x78] sm:$0xff] }
  0x48   :  { %v1274_v5 = vcombine.low %v867_v63, %v868_v0 }
  0x4a   :  { %1311 = vmatpush3.bf16.msra.mxu0 %v1419_v1  ;;  %v1272_v1 = vcombine.low %v865_v59, %v866_v60  ;;  %v593_v60 = vld [vmem:[%s1875_s2 + $0x4] sm:$0x3] }
  0x4b   :  { %1312 = vmatprep.subr.bf16.mxu0 %v1420_v2  ;;  %v1275_v2 = vcombine.high %v867_v63, %v868_v0 }
  0x4e   :  { %1313 = vmatpush3.bf16.msra.mxu0 %v1421_v3  ;;  %v869_v3 = vld [vmem:[%s1874_s1 + $0x98] sm:$0xff] }
  0x4f   :  { %645 = vmatprep.subr.bf16.mxu0 %v1248_v7  ;;  %v1277_v7 = vcombine.high %v869_v3, %v870_v4  ;;  %v1276_v10 = vcombine.low %v869_v3, %v870_v4 }
  0xe8   :  { %v123_v16 = vpop.f32.mrb[0].mxu1 }
  0xe9   :  { %v124_v17 = vadd.f32 %v123_v16, %v38_v14  ;;  %v125_v18 = vpop.f32.mrb[1].mxu1  ;;  %v1424_v16 = vld [vmem:[%s1876_s3 + $0x148] sm:$0xff]  }
  0xea   :  { %v126_v19 = vadd.f32 %v125_v18, %v42_v15  ;;  %v127_v20 = vpop.f32.mrb[2].mxu1  ;;  %v1427_v18 = vld [vmem:[%s1876_s3 + $0x110] sm:$0xff]  }
  0xeb   :  { %v132_v21 = vmax.f32 %v124_v17, 0.0  ;;  %v128_v22 = vadd.f32 %v127_v20, %v38_v14  ;;  %v129_v23 = vpop.f32.mrb[3].mxu1  ;;  %v1425_v17 = vld [vmem:[%s1876_s3 + $0x108] sm:$0xff]   ;;  %v1429_v20 = vld [vmem:[%s1876_s3 + $0x118] sm:$0xff]  }
  0xec   :  { %v130_v24 = vadd.f32 %v129_v23, %v42_v15  ;;  %v133_v27 = vmax.f32 %v126_v19, 0.0  ;;  %v1423_v15 = vld [vmem:[%s1876_s3 + $0x100] sm:$0xff]   ;;  %v1428_v19 = vld [vmem:[%s1876_s3 + $0x158] sm:$0xff]  }
  0xed   :  { %v134_v26 = vmax.f32 %v128_v22, 0.0  ;;  %v1431_v22 = vld [vmem:[%s1876_s3 + $0x1c0] sm:$0xff]  }
  0xee   :  { %v135_v28 = vmax.f32 %v130_v24, 0.0  ;;  %v1433_v23 = vld [vmem:[%s1876_s3 + $0x180] sm:$0xff]  }
  0xef   :  { %v136_v29 = vpack.c.bf16 %v134_v26, %v132_v21  ;;  %v1430_v21 = vld [vmem:[%s1876_s3 + $0x160] sm:$0xff]   ;;  %v1435_v26 = vld [vmem:[%s1876_s3 + $0x1c8] sm:$0xff]  }
  0xf0   :  { %v137_v30 = vpack.c.bf16 %v135_v28, %v133_v27  ;;  %v1432_v24 = vld [vmem:[%s1876_s3 + $0x120] sm:$0xff]   ;;  %v1434_v27 = vld [vmem:[%s1876_s3 + $0x168] sm:$0xff]  }
  0xf1   :  { %v1436_v28 = vld [vmem:[%s1876_s3 + $0x128] sm:$0xff]  }
  0xf2   :  { %576 = vmatprep.mubr.bf16.mxu1 %v137_v30  ;;  %v1438_v30 = vld [vmem:[%s1876_s3 + $0x170] sm:$0xff]  }
  0xf3   :  { %577 = vmatmul.mubr.bf16.vlgmr.msra.gmra.mrb[8].mxu1 %v136_v29  ;;  %v1437_v29 = vld [vmem:[%s1876_s3 + $0x188] sm:$0xff]  }
  0xf8   :  { %v264_v34 = vpop.f32.mrb[4].mxu1 }
  0xf9   :  { %v265_v35 = vadd.f32 %v264_v34, %v183_v32  ;;  %v266_v36 = vpop.f32.mrb[5].mxu1  ;;  %v1442_v34 = vld [vmem:[%s1876_s3 + $0x178] sm:$0xff]  }
  0xfa   :  { %v267_v37 = vadd.f32 %v266_v36, %v187_v33  ;;  %v268_v38 = vpop.f32.mrb[6].mxu1  ;;  %v1444_v36 = vld [vmem:[%s1876_s3 + $0x138] sm:$0xff]  }
  0xfb   :  { %v269_v39 = vadd.f32 %v268_v38, %v183_v32  ;;  %v270_v40 = vpop.f32.mrb[7].mxu1  ;;  %v273_v42 = vmax.f32 %v265_v35, 0.0  ;;  %v1440_v32 = vld [vmem:[%s1876_s3 + $0x130] sm:$0xff]   ;;  %v1443_v35 = vld [vmem:[%s1876_s3 + $0x1d8] sm:$0xff]   ;;  %v1446_v38 = vld [vmem:[%s1876_s3 + $0x1e0] sm:$0xff]  }
  0xfc   :  { %v271_v41 = vadd.f32 %v270_v40, %v187_v33  ;;  %v274_v44 = vmax.f32 %v267_v37, 0.0  ;;  %v1441_v33 = vld [vmem:[%s1876_s3 + $0x190] sm:$0xff]   ;;  %v1445_v37 = vld [vmem:[%s1876_s3 + $0x198] sm:$0xff]   ;;  %v1448_v40 = vld [vmem:[%s1876_s3 + $0x1e8] sm:$0xff]  }
  0xfd   :  { %v275_v43 = vmax.f32 %v269_v39, 0.0  ;;  %v1447_v39 = vld [vmem:[%s1876_s3 + $0x1a0] sm:$0xff]  }
  0xfe   :  { %v276_v45 = vmax.f32 %v271_v41, 0.0  ;;  %v1449_v41 = vld [vmem:[%s1876_s3 + $0x1a8] sm:$0xff]  }
  0xff   :  { %v277_v48 = vpack.c.bf16 %v275_v43, %v273_v42  ;;  %v1450_v42 = vld [vmem:[%s1876_s3 + $0x1f0] sm:$0xff]  }
 0x100   :  { %v278_v49 = vpack.c.bf16 %v276_v45, %v274_v44  ;;  %v1451_v43 = vld [vmem:[%s1876_s3 + $0x1b0] sm:$0xff]   ;;  %v1452_v44 = vld [vmem:[%s1876_s3 + $0x1f8] sm:$0xff]  }
 0x101   :  { %v1453_v45 = vld [vmem:[%s1876_s3 + $0x1b8] sm:$0xff]  }
 0x102   :  { %439 = vmatprep.mubr.bf16.mxu0 %v278_v49 }
 0x103   :  { %440 = vmatmul.mubr.bf16.vlgmr.msra.gmra.mrb[0].mxu0 %v277_v48 }
 0x104   :  { %646 = vmatpush1.bf16.msra.mxu0 %v1247_v8  ;;  %677 = vmatprep.mubr.bf16.mxu0 %v1486_v6  ;;  %v871_v8 = vld [vmem:[%s1874_s1 + $0xd8] sm:$0xff] }
 0x105   :  { %647 = vmatprep.subr.bf16.mxu0 %v1250_v50  ;;  %v1279_v12 = vcombine.high %v871_v8, %v872_v9  ;;  %v1278_v14 = vcombine.low %v871_v8, %v872_v9 }
 0x108   :  { %648 = vmatpush1.bf16.msra.mxu0 %v1249_v53 }
 0x109   :  { %649 = vmatprep.subr.bf16.mxu0 %v1252_v54 }
 0x10c   :  { %650 = vmatpush1.bf16.msra.mxu0 %v1251_v57 }
 0x10d   :  { %651 = vmatprep.subr.bf16.mxu0 %v1254_v58 }
 0x110   :  { %652 = vmatpush1.bf16.msra.mxu0 %v1253_v61  ;;  %v598_v61 = vrot.slane %v593_v60, %v1684_v11 }
 0x111   :  { %925 = vmatprep.subr.bf16.mxu0 %v1273_v62  ;;  %v602_v62 = vrot.slane %v593_v60, %v1689_v13 }
 0x113   :  { %1255 = vmatmul.mubr.msk.bf16.vlgmr.msra.gmra.mrb[4].mxu0 %vm85_vm0, %v1566_v25 }
 0x114   :  { %926 = vmatpush1.bf16.msra.mxu0 %v1272_v1  ;;  %957 = vmatprep.mubr.bf16.mxu0 %v1486_v6  ;;  %v1422_v6 = vld [vmem:[%s1876_s3 + $0x140] sm:$0xff]  }
 0x115   :  { %927 = vmatprep.subr.bf16.mxu0 %v1275_v2  ;;  %1342 = vmatprep.subr.bf16.mxu1 %v1422_v6 }
 0x116   :  { %1343 = vmatpush3.bf16.msra.mxu1 %v1423_v15  ;;  %v873_v15 = vld [vmem:[%s1875_s2 + $0x6] sm:$0x3] }
 0x117   :  { %1344 = vmatprep.subr.bf16.mxu1 %v1424_v16  ;;  %v878_v16 = vrot.slane %v873_v15, %v1684_v11 }
 0x118   :  { %928 = vmatpush1.bf16.msra.mxu0 %v1274_v5 }
 0x119   :  { %929 = vmatprep.subr.bf16.mxu0 %v1277_v7 }
 0x11a   :  { %1345 = vmatpush3.bf16.msra.mxu1 %v1425_v17  ;;  %v882_v17 = vrot.slane %v873_v15, %v1689_v13 }
 0x11c   :  { %930 = vmatpush1.bf16.msra.mxu0 %v1276_v10 }
 0x11d   :  { %931 = vmatprep.subr.bf16.mxu0 %v1279_v12 }
 0x120   :  { %932 = vmatpush1.bf16.msra.mxu0 %v1278_v14 }
 0x121   :  { %1364 = vmatprep.subr.bf16.mxu0 %v1431_v22 }
 0x123   :  { %1280 = vmatmul.mubr.msk.bf16.vlgmr.msra.gmra.mrb[8].mxu0 %vm85_vm0, %v1566_v25  ;;  %v1426_v25 = vld [vmem:[%s1876_s3 + $0x150] sm:$0xff]  }
 0x124   :  { %1346 = vmatprep.subr.bf16.mxu1 %v1426_v25  ;;  %1365 = vmatpush3.bf16.msra.mxu0 %v1433_v23 }
 0x125   :  { %1347 = vmatpush3.bf16.msra.mxu1 %v1427_v18  ;;  %1366 = vmatprep.subr.bf16.mxu0 %v1435_v26 }
 0x126   :  { %1348 = vmatprep.subr.bf16.mxu1 %v1428_v19 }
 0x128   :  { %1367 = vmatpush3.bf16.msra.mxu0 %v1437_v29 }
 0x129   :  { %1349 = vmatpush3.bf16.msra.mxu1 %v1429_v20  ;;  %1368 = vmatprep.subr.bf16.mxu0 %v1439_v31 }
 0x12a   :  { %1350 = vmatprep.subr.bf16.mxu1 %v1430_v21 }
 0x12c   :  { %1369 = vmatpush3.bf16.msra.mxu0 %v1441_v33 }
 0x12d   :  { %1351 = vmatpush3.bf16.msra.mxu1 %v1432_v24  ;;  %1370 = vmatprep.subr.bf16.mxu0 %v1443_v35 }
 0x12e   :  { %1352 = vmatprep.subr.bf16.mxu1 %v1434_v27 }
 0x130   :  { %1371 = vmatpush3.bf16.msra.mxu0 %v1445_v37 }
 0x131   :  { %1353 = vmatpush3.bf16.msra.mxu1 %v1436_v28  ;;  %1372 = vmatprep.subr.bf16.mxu0 %v1446_v38 }
 0x132   :  { %1354 = vmatprep.subr.bf16.mxu1 %v1438_v30 }
 0x134   :  { %1373 = vmatpush3.bf16.msra.mxu0 %v1447_v39 }
 0x135   :  { %1355 = vmatpush3.bf16.msra.mxu1 %v1440_v32  ;;  %1374 = vmatprep.subr.bf16.mxu0 %v1448_v40 }
 0x136   :  { %1356 = vmatprep.subr.bf16.mxu1 %v1442_v34 }
 0x138   :  { %1375 = vmatpush3.bf16.msra.mxu0 %v1449_v41 }
 0x139   :  { %1357 = vmatpush3.bf16.msra.mxu1 %v1444_v36  ;;  %1376 = vmatprep.subr.bf16.mxu0 %v1450_v42 }
 0x13c   :  { %1377 = vmatpush3.bf16.msra.mxu0 %v1451_v43  ;;  %v1297_v43 = vld [vmem:[%s1877_s4] ss:$0 sm:$0xff]  ;;  %s1487_s4 = smov [#allocation2]  }
 0x13d   :  { %1378 = vmatprep.subr.bf16.mxu0 %v1452_v44  ;;  %s1186_s12 = sshll.u32 %s1487_s4, 4  ;;  %s1187_s12 = int_to_ptr.vmem [resolvable:$true] %s1186_s12 }
 0x13e   :  { %s1462_s13 = scalar_lea.vmem %s1187_s12, 256  ;;  %p1467_p1 = scmp.lt.s32.totalorder %s1187_s12, %s1187_s12 }
 0x13f   :  { %p1463_p0 = scmp.ne.s32.totalorder %s1187_s12, %s1462_s13  ;;  %p1468_p2 = scmp.lt.s32.totalorder %s1462_s13, %s1462_s13 }
 0x140   :  { %1379 = vmatpush3.bf16.msra.mxu0 %v1453_v45 }
 0x141   :  { %p1469_p3 = por %p1468_p2, %p1467_p1 }
 0x143   :  { %p1470_p4 = pnand %p1469_p3, %p1463_p0 }
 0x1c6   :  { %v1336_v46 = vpop.f32.mrb[8].mxu1 }
 0x1c7   :  { %v1337_v47 = vpop.f32.mrb[9].mxu1 }
 0x1c8   :  { %v1338_v48 = vadd.f32 %v1337_v47, %v1336_v46  ;;  %v1339_v49 = vpop.f32.mrb[10].mxu1 }
 0x1c9   :  { %v1340_v50 = vpop.f32.mrb[11].mxu1 }
 0x1ca   :  { %v1341_v51 = vadd.f32 %v1340_v50, %v1339_v49 }
 0x1d6   :  { %v1314_v52 = vpop.f32.mrb[0].mxu0 }
 0x1d7   :  { %v1315_v53 = vpop.f32.mrb[1].mxu0 }
 0x1d8   :  { %v1316_v54 = vadd.f32 %v1315_v53, %v1314_v52  ;;  %v1317_v55 = vpop.f32.mrb[2].mxu0 }
 0x1d9   :  { %v1318_v56 = vpop.f32.mrb[3].mxu0 }
 0x1da   :  { %v579_v57 = vadd.f32 %v1338_v48, %v1316_v54  ;;  %v1319_v58 = vadd.f32 %v1318_v56, %v1317_v55 }
 0x1dc   :  { %v582_v59 = vadd.f32 %v1341_v51, %v1319_v58 }
 0x1e6   :  { %v679_v63 = vpop.f32.mrb[4].mxu0 }
 0x1e7   :  { %v680_v0 = vadd.f32 %v679_v63, %v598_v61  ;;  %v681_v1 = vpop.f32.mrb[5].mxu0 }
 0x1e8   :  { %v682_v2 = vadd.f32 %v681_v1, %v602_v62  ;;  %v683_v3 = vpop.f32.mrb[6].mxu0 }
 0x1e9   :  { %v688_v4 = vmax.f32 %v680_v0, 0.0  ;;  %v684_v5 = vadd.f32 %v683_v3, %v598_v61  ;;  %v685_v7 = vpop.f32.mrb[7].mxu0 }
 0x1ea   :  { %v686_v8 = vadd.f32 %v685_v7, %v602_v62  ;;  %v689_v10 = vmax.f32 %v682_v2, 0.0 }
 0x1eb   :  { %v690_v9 = vmax.f32 %v684_v5, 0.0 }
 0x1ec   :  { %v691_v12 = vmax.f32 %v686_v8, 0.0 }
 0x1ed   :  { %v692_v14 = vpack.c.bf16 %v690_v9, %v688_v4 }
 0x1ee   :  { %v693_v6 = vpack.c.bf16 %v691_v12, %v689_v10 }
 0x1f0   :  { %854 = vmatprep.mubr.bf16.mxu1 %v693_v6 }
 0x1f1   :  { %855 = vmatmul.mubr.bf16.vlgmr.msra.gmra.mrb[12].mxu1 %v692_v14 }
 0x1f6   :  { %v959_v25 = vpop.f32.mrb[8].mxu0 }
 0x1f7   :  { %v960_v18 = vadd.f32 %v959_v25, %v878_v16  ;;  %v961_v19 = vpop.f32.mrb[9].mxu0 }
 0x1f8   :  { %v962_v20 = vadd.f32 %v961_v19, %v882_v17  ;;  %v963_v21 = vpop.f32.mrb[10].mxu0 }
 0x1f9   :  { %v964_v22 = vadd.f32 %v963_v21, %v878_v16  ;;  %v965_v23 = vpop.f32.mrb[11].mxu0  ;;  %v968_v26 = vmax.f32 %v960_v18, 0.0 }
 0x1fa   :  { %v966_v24 = vadd.f32 %v965_v23, %v882_v17  ;;  %v969_v28 = vmax.f32 %v962_v20, 0.0 }
 0x1fb   :  { %v970_v27 = vmax.f32 %v964_v22, 0.0 }
 0x1fc   :  { %v971_v29 = vmax.f32 %v966_v24, 0.0 }
 0x1fd   :  { %v972_v30 = vpack.c.bf16 %v970_v27, %v968_v26 }
 0x1fe   :  { %v973_v31 = vpack.c.bf16 %v971_v29, %v969_v28 }
 0x200   :  { %1134 = vmatprep.mubr.bf16.mxu0 %v973_v31 }
 0x201   :  { %1135 = vmatmul.mubr.bf16.vlgmr.msra.gmra.mrb[12].mxu0 %v972_v30 }
 0x2c4   :  { %v1358_v32 = vpop.f32.mrb[12].mxu1 }
 0x2c5   :  { %v1359_v11 = vpop.f32.mrb[13].mxu1 }
 0x2c6   :  { %v1360_v33 = vadd.f32 %v1359_v11, %v1358_v32  ;;  %v1361_v13 = vpop.f32.mrb[14].mxu1 }
 0x2c7   :  { %v1362_v34 = vpop.f32.mrb[15].mxu1 }
 0x2c8   :  { %v863_v35 = vadd.f32 %v1360_v33, %v579_v57  ;;  %v1363_v36 = vadd.f32 %v1362_v34, %v1361_v13 }
 0x2ca   :  { %v864_v37 = vadd.f32 %v1363_v36, %v582_v59 }
 0x2d4   :  { %v1380_v38 = vpop.f32.mrb[12].mxu0 }
 0x2d5   :  { %v1381_v39 = vpop.f32.mrb[13].mxu0 }
 0x2d6   :  { %v1382_v40 = vadd.f32 %v1381_v39, %v1380_v38  ;;  %v1383_v41 = vpop.f32.mrb[14].mxu0 }
 0x2d7   :  { %v1384_v42 = vpop.f32.mrb[15].mxu0 }
 0x2d8   :  { %v1143_v44 = vadd.f32 %v1382_v40, %v863_v35  ;;  %v1385_v45 = vadd.f32 %v1384_v42, %v1383_v41 }
 0x2da   :  { %v1144_v46 = vadd.f32 %v1385_v45, %v864_v37  ;;  %v1152_v47 = vadd.f32 %v1297_v43, %v1143_v44 }
 0x2dc   :  { %v1155_v48 = vsel %vm1154_vm1, %v1152_v47, -inf  ;;  %v1153_v49 = vadd.f32 %v1297_v43, %v1144_v46 }
 0x2dd   :  { %1156 = vmax.xlane.f32.xlu0 %v1155_v48 }
 0x2de   :  { %v1158_v50 = vsel %vm1154_vm1, %v1153_v49, -inf }
 0x2e1   :  { %1159 = vmax.xlane.f32.xlu0 %v1158_v50 }
 0x36a   :  { %v1157_v51 = vpop.xlane.xlu0 %1156 }
 0x36b   :  { %v1161_v52 = vsub.f32 %v1152_v47, %v1157_v51 }
 0x36d   :  { %v1163_v53 = vmul.f32 1.442695, %v1161_v52 }
 0x36e   :  { %v1160_v54 = vpop.xlane.xlu0 %1159 }
 0x36f   :  { %1454 = vpow2.f32 %v1163_v53  ;;  %v1162_v55 = vsub.f32 %v1153_v49, %v1160_v54 }
 0x371   :  { %v1165_v56 = vmul.f32 1.442695, %v1162_v55 }
 0x373   :  { %1456 = vpow2.f32 %v1165_v56 }
 0x379   :  { %v1455_v57 = vpop.eup %1454 }
 0x37a   :  { %v1167_v58 = vsel %vm1154_vm1, %v1455_v57, 0.0 }
 0x37b   :  { %1168 = vadd.xlane.f32.xlu1 %v1167_v58 }
 0x37d   :  { %v1457_v59 = vpop.eup %1456 }
 0x37e   :  { %v1170_v60 = vsel %vm1154_vm1, %v1457_v59, 0.0 }
 0x37f   :  { %1171 = vadd.xlane.f32.xlu1 %v1170_v60 }
 0x408   :  { %v1169_v61 = vpop.xlane.xlu1 %1168 }
 0x409   :  { %1458 = vlog2.f32 %v1169_v61 }
 0x40c   :  { %v1172_v62 = vpop.xlane.xlu1 %1171 }
 0x40d   :  { %1460 = vlog2.f32 %v1172_v62 }
 0x413   :  { %v1459_v63 = vpop.eup %1458 }
 0x414   :  { %v1174_v0 = vmul.f32 0.6931472, %v1459_v63 }
 0x416   :  { %v1177_v1 = vsub.f32 %v1161_v52, %v1174_v0 }
 0x417   :  { %v1461_v2 = vpop.eup %1460 }
 0x418   :  { %1179 = vst.msk [vmem:[#allocation2] sm:$0xff] %vm1154_vm1, %v1177_v1  ;;  %v1176_v3 = vmul.f32 0.6931472, %v1461_v2 }
 0x41a   :  { %v1178_v4 = vsub.f32 %v1162_v55, %v1176_v3 }
 0x41c   :  { %1180 = vst.msk [vmem:[#allocation2 + $0x8] sm:$0xff] %vm1154_vm1, %v1178_v4 }
 0x41d   :  { %1473 = shalt.err (!%p1470_p4)
}
 0x41e   :  { %s1474_s16 = scalar_lea.hbm %s1878_s5, 256 }
 0x41f   :  { %p1475_p5 = scmp.ne.s32.totalorder %s1878_s5, %s1474_s16  ;;  %p1478_p6 = scmp.lt.u32.totalorder %s1474_s16, %s1878_s5 }
 0x421   :  { %p1480_p7 = pnand %p1478_p6, %p1475_p5 }
 0x423   :  { %1483 = shalt.err (!%p1480_p7)
}
 0x424   :  { %s1488_s21 = smov 128   ;;  %s1489_s22 = smov 8  }
 0x425   :  { %1192 = dma.vmem_to_hbm [thread:$0]  %s1187_s12, 256, %s1878_s5, [#allocation3], %s1488_s21, %s1488_s21, %s1489_s22  }
 0x426   :  { %1484 = dma.done.wait [#allocation3], 256  }
 0x427   :  { %1485 = vsyncadd [#allocation3], 4294967040 }
 0x428   :  { %1196 = vsyncpa [#allocation3], 1 }

</bundles_post_ra>
